<compile_context>
chip_gen: v7x
topology: tpu7x:2x2x1
jax: 0.10.0
libtpu: 0.0.40
codegen_flags: <defaults>
</compile_context>

<pallas_src>
import functools

import jax
import jax.numpy as jnp
from jax import lax
from jax.experimental import pallas as pl
from jax.experimental.pallas import tpu as pltpu


WORD_EMBED_SIZE = 32
P_DROPOUT = 0.3                # training-mode dropout prob; 0.0 == eval mode
PACK = 4                       # rows of E=32 packed into one 128-lane row
DEFAULT_BLOCK_ROWS = 32768     # original (unpacked) rows per grid step

# murmur3-style finalizer constants as signed int32 (interpret-mode fallback).
_C_GOLDEN = -1640531527   # 0x9E3779B9
_C_MIX1 = -2048144789     # 0x85EBCA6B
_C_MIX2 = -1028477387     # 0xC2B2AE35


def _hash_bits31(idx, seed):
    """Fallback 31-bit uniform int per element (pure int32 VPU ops)."""
    h = idx ^ (seed * jnp.int32(_C_GOLDEN))
    h = h * jnp.int32(_C_MIX1)
    h = h ^ lax.shift_right_logical(h, 16)
    h = h * jnp.int32(_C_MIX2)
    h = h ^ lax.shift_right_logical(h, 13)
    h = h * jnp.int32(_C_GOLDEN)
    h = h ^ lax.shift_right_logical(h, 16)
    return h & jnp.int32(0x7FFFFFFF)


def _highway_kernel(seed_ref,               # scalar-prefetch (SMEM), shape (1,)
                    x_ref, w_ref, b_ref,    # inputs (VMEM)
                    o_ref,                  # output (VMEM)
                    *, p_dropout: float, lanes: int, use_hw_prng: bool):
    # x_ref: (bp, lanes) lane-packed rows; w_ref: (lanes, 2*lanes) block-diag
    # fused [proj | gate]; b_ref: (1, 2*lanes) tiled biases.
    x = x_ref[...].astype(jnp.float32)

    pg = jnp.dot(x, w_ref[...], preferred_element_type=jnp.float32) + b_ref[...]
    proj = jnp.maximum(pg[:, :lanes], 0.0)              # relu(x @ Wp^T + bp)
    # sigmoid via tanh: transcendental stays on the EUP slot (VALU binds in
    # training mode); mathematically identical to jax.nn.sigmoid.
    gate = 0.5 * (jnp.tanh(0.5 * pg[:, lanes:]) + 1.0)

    # Highway blend: gate*proj + (1-gate)*x == x + gate*(proj - x)
    hwy = x + gate * (proj - x)

    # Inverted dropout (training semantics).  PyTorch RNG stream not matched.
    if p_dropout > 0.0:
        if use_hw_prng:
            pltpu.prng_seed(seed_ref[0], pl.program_id(0))
            bits = pltpu.prng_random_bits(hwy.shape)
            u31 = pltpu.bitcast(bits, jnp.int32) & jnp.int32(0x7FFFFFFF)
        else:
            # Interpret-mode fallback: per-tile seed fold + flat index hash.
            seed_tile = seed_ref[0] + pl.program_id(0) * jnp.int32(16777619)
            r = lax.broadcasted_iota(jnp.int32, hwy.shape, 0)
            c = lax.broadcasted_iota(jnp.int32, hwy.shape, 1)
            u31 = _hash_bits31(r * jnp.int32(hwy.shape[1]) + c, seed_tile)
        thresh = jnp.int32(int(round(p_dropout * (1 << 31))))
        keep = u31 >= thresh                   # P(keep) ~= 1 - p
        hwy = jnp.where(keep, hwy * (1.0 / (1.0 - p_dropout)), 0.0)

    o_ref[...] = hwy.astype(o_ref.dtype)


def prepare_highway_params(w_proj, b_proj, w_gate, b_gate, pack=PACK):
    """One-time fusion of the two nn.Linear params (do NOT redo per call).

    w_* are PyTorch-convention (out_features, in_features); b_* are (E,).
    Builds a block-diagonal [Wp^T | Wg^T] weight of shape (pack*E, 2*pack*E)
    and tiled biases (1, 2*pack*E) so the kernel can operate directly on the
    lane-packed (N/pack, pack*E) view of x with a single MXU matmul and no
    lane re-alignment.
    """
    E = w_proj.shape[1]
    eye = jnp.eye(pack, dtype=w_proj.dtype)
    wp_bd = jnp.kron(eye, w_proj.T)                       # (pack*E, pack*E)
    wg_bd = jnp.kron(eye, w_gate.T)                       # (pack*E, pack*E)
    w_fused = jnp.concatenate([wp_bd, wg_bd], axis=1)     # (pack*E, 2*pack*E)
    b_fused = jnp.concatenate(
        [jnp.tile(b_proj, pack), jnp.tile(b_gate, pack)]).reshape(1, 2 * pack * E)
    return w_fused, b_fused


def _round_up(a, m):
    return (a + m - 1) // m * m


@functools.partial(jax.jit,
                   static_argnames=("p_dropout", "block_rows", "use_hw_prng"))
def highway_forward(x, w_fused, b_fused, seed, *, p_dropout=P_DROPOUT,
                    block_rows=DEFAULT_BLOCK_ROWS, use_hw_prng=True):
    """x: (..., E) float32.  seed: int32 scalar (vary per training step)."""
    orig_shape = x.shape
    E = orig_shape[-1]
    lanes = w_fused.shape[0]
    pack = lanes // E
    assert w_fused.shape == (lanes, 2 * lanes)
    assert b_fused.shape == (1, 2 * lanes)

    x2 = x.reshape(-1, E)
    n = x2.shape[0]

    # Lane-dense view: (n, E) -> (n/pack, pack*E).  Free row-major reshape in
    # the common case; only pads (a full copy) when n % pack != 0.
    n_rows = n
    if n % pack:
        n_rows = _round_up(n, pack)
        x2 = jnp.pad(x2, ((0, n_rows - n), (0, 0)))
    xp = x2.reshape(n_rows // pack, lanes)
    rows = xp.shape[0]

    # Packed-row tile: multiple of 8 unless it covers the whole array.
    bp = max(8, (block_rows // pack) // 8 * 8)
    if rows <= bp:
        bp = rows                       # single (full-extent) block is legal
    grid = (pl.cdiv(rows, bp),)         # partial tail block; no padding copy

    seed_arr = jnp.asarray(seed, dtype=jnp.int32).reshape(1)
    kernel = functools.partial(_highway_kernel, p_dropout=float(p_dropout),
                               lanes=lanes, use_hw_prng=use_hw_prng)

    out = pl.pallas_call(
        kernel,
        out_shape=jax.ShapeDtypeStruct((rows, lanes), x.dtype),
        grid_spec=pltpu.PrefetchScalarGridSpec(
            num_scalar_prefetch=1,
            grid=grid,
            in_specs=[
                pl.BlockSpec((bp, lanes), lambda i, seed: (i, 0)),       # x tile
                pl.BlockSpec((lanes, 2 * lanes), lambda i, seed: (0, 0)),  # W (resident)
                pl.BlockSpec((1, 2 * lanes), lambda i, seed: (0, 0)),      # b (resident)
            ],
            out_specs=pl.BlockSpec((bp, lanes), lambda i, seed: (i, 0)),
        ),
        compiler_params=pltpu.CompilerParams(
            dimension_semantics=("parallel",),     # rows independent
            vmem_limit_bytes=32 * 1024 * 1024,     # safe on v5e/v6e/v7x
        ),
    )(seed_arr, xp, w_fused, b_fused)

    out = out.reshape(n_rows, E)
    if n_rows != n:
        out = out[:n]
    return out.reshape(orig_shape)


def _highway_ref(x, w_proj, b_proj, w_gate, b_gate):
    """Pure-JAX reference of the PyTorch forward (eval mode, no dropout)."""
    proj = jnp.maximum(x @ w_proj.T + b_proj, 0.0)
    gate = jax.nn.sigmoid(x @ w_gate.T + b_gate)
    return gate * proj + (1.0 - gate) * x


def _init_linear(key, fan_in, fan_out):
    """PyTorch-style nn.Linear init: U(-1/sqrt(fan_in), 1/sqrt(fan_in))."""
    kw, kb = jax.random.split(key)
    bound = 1.0 / jnp.sqrt(fan_in)
    w = jax.random.uniform(kw, (fan_out, fan_in), jnp.float32, -bound, bound)
    b = jax.random.uniform(kb, (fan_out,), jnp.float32, -bound, bound)
    return w, b


if __name__ == "__main__":
    E = WORD_EMBED_SIZE
    batch, seq = 4, 16          # x_conv_out: (batch, seq, E) word embeddings

    key = jax.random.PRNGKey(0)
    kx, kp, kg = jax.random.split(key, 3)

    x = jax.random.normal(kx, (batch, seq, E), dtype=jnp.float32)
    w_proj, b_proj = _init_linear(kp, E, E)
    w_gate, b_gate = _init_linear(kg, E, E)

    # One-time param fusion (kept outside the hot path).
    w_fused, b_fused = prepare_highway_params(w_proj, b_proj, w_gate, b_gate)

    # Eval-mode (p=0): check against the pure-JAX reference.
    out_eval = jax.block_until_ready(
        highway_forward(x, w_fused, b_fused, 0, p_dropout=0.0))
    ref = _highway_ref(x, w_proj, b_proj, w_gate, b_gate)
    assert out_eval.shape == x.shape and out_eval.dtype == jnp.float32
    assert jnp.allclose(out_eval, ref, atol=5e-5, rtol=5e-5)

    # Training-mode (p=0.3): in-kernel inverted dropout via hardware PRNG;
    # falls back to the integer-hash path if PRNG lowering is unavailable
    # (e.g. interpret/emulator environments).
    try:
        out_train = jax.block_until_ready(
            highway_forward(x, w_fused, b_fused, 1234, p_dropout=P_DROPOUT,
                            use_hw_prng=True))
    except Exception:
        out_train = jax.block_until_ready(
            highway_forward(x, w_fused, b_fused, 1234, p_dropout=P_DROPOUT,
                            use_hw_prng=False))
    assert out_train.shape == x.shape and out_train.dtype == jnp.float32

    # Statistical validation of the dropout path: keep-rate ~= 1-p and kept
    # elements equal the eval output scaled by 1/(1-p).
    p = P_DROPOUT
    ref_flat = jnp.ravel(ref)
    tr_flat = jnp.ravel(out_train)
    dropped = tr_flat == 0.0
    drop_frac = float(jnp.mean(dropped.astype(jnp.float32)))
    assert 0.1 < drop_frac < 0.5, f"drop fraction {drop_frac} not near {p}"
    kept_err = jnp.where(dropped, 0.0, jnp.abs(tr_flat - ref_flat / (1.0 - p)))
    assert float(jnp.max(kept_err)) < 1e-3

    print("KERNEL_OK")
</pallas_src>

<mosaic_0001>
module attributes {stable_mosaic.version = 11 : i64} {
  func.func @_highway_kernel(%arg0: i32, %arg1: memref<1xi32, #tpu.memory_space<smem>>, %arg2: memref<16x128xf32, #tpu.memory_space<vmem>>, %arg3: memref<128x256xf32, #tpu.memory_space<vmem>>, %arg4: memref<1x256xf32, #tpu.memory_space<vmem>>, %arg5: memref<16x128xf32, #tpu.memory_space<vmem>>) attributes {dimension_semantics = [#tpu.dimension_semantics<parallel>], iteration_bounds = array<i64: 1>, scalar_prefetch = 1 : i64, scratch_operands = 0 : i64, tpu.core_type = #tpu.core_type<tc>, window_params = [{transform_indices = @transform_0, window_bounds = array<i64: 16, 128>}, {pipeline_mode = #tpu.pipeline_mode<synchronous>, transform_indices = @transform_1, window_bounds = array<i64: 128, 256>}, {pipeline_mode = #tpu.pipeline_mode<synchronous>, transform_indices = @transform_2, window_bounds = array<i64: 1, 256>}, {transform_indices = @transform_3, window_bounds = array<i64: 16, 128>}]} {
    %c0 = arith.constant 0 : index
    %c0_0 = arith.constant 0 : index
    %0 = vector.load %arg2[%c0, %c0_0] : memref<16x128xf32, #tpu.memory_space<vmem>>, vector<16x128xf32>
    %c0_1 = arith.constant 0 : index
    %c0_2 = arith.constant 0 : index
    %1 = vector.load %arg3[%c0_1, %c0_2] : memref<128x256xf32, #tpu.memory_space<vmem>>, vector<128x256xf32>
    %cst = arith.constant dense<0.000000e+00> : vector<16x256xf32>
    %2 = tpu.matmul %0, %1, %cst {dimension_numbers = #tpu.dot_dimension_numbers<[1], [0], [0], [1], [0, 0, 1, 1], [], []>} : vector<16x128xf32>, vector<128x256xf32>, vector<16x256xf32> -> vector<16x256xf32>
    %c0_3 = arith.constant 0 : index
    %c0_4 = arith.constant 0 : index
    %3 = vector.load %arg4[%c0_3, %c0_4] : memref<1x256xf32, #tpu.memory_space<vmem>>, vector<1x256xf32>
    %4 = vector.broadcast %3 : vector<1x256xf32> to vector<16x256xf32>
    %5 = arith.addf %2, %4 : vector<16x256xf32>
    %6 = vector.extract_strided_slice %5 {offsets = [0, 0], sizes = [16, 128], strides = [1, 1]} : vector<16x256xf32> to vector<16x128xf32>
    %cst_5 = arith.constant 0.000000e+00 : f32
    %7 = vector.broadcast %cst_5 : f32 to vector<16x128xf32>
    %8 = arith.maximumf %6, %7 : vector<16x128xf32>
    %9 = vector.extract_strided_slice %5 {offsets = [0, 128], sizes = [16, 128], strides = [1, 1]} : vector<16x256xf32> to vector<16x128xf32>
    %cst_6 = arith.constant 5.000000e-01 : f32
    %10 = vector.broadcast %cst_6 : f32 to vector<16x128xf32>
    %11 = arith.mulf %10, %9 : vector<16x128xf32>
    %12 = math.tanh %11 : vector<16x128xf32>
    %cst_7 = arith.constant 1.000000e+00 : f32
    %13 = vector.broadcast %cst_7 : f32 to vector<16x128xf32>
    %14 = arith.addf %12, %13 : vector<16x128xf32>
    %cst_8 = arith.constant 5.000000e-01 : f32
    %15 = vector.broadcast %cst_8 : f32 to vector<16x128xf32>
    %16 = arith.mulf %15, %14 : vector<16x128xf32>
    %17 = arith.subf %8, %0 : vector<16x128xf32>
    %18 = arith.mulf %16, %17 : vector<16x128xf32>
    %19 = arith.addf %0, %18 : vector<16x128xf32>
    %c0_9 = arith.constant 0 : index
    %c0_10 = arith.constant 0 : index
    %20 = vector.load %arg5[%c0_9, %c0_10] : memref<16x128xf32, #tpu.memory_space<vmem>>, vector<16x128xf32>
    tpu.vector_store %arg5[%c0_9, %c0_10], %19 {strides = array<i32>} : memref<16x128xf32, #tpu.memory_space<vmem>>, vector<16x128xf32>,
    return
  }
  func.func @transform_0(%arg0: i32, %arg1: memref<1xi32, #tpu.memory_space<smem>>) -> (i32, i32) {
    %c0_i32 = arith.constant 0 : i32
    %c0_i32_0 = arith.constant 0 : i32
    return %arg0, %c0_i32 : i32, i32
  }
  func.func @transform_1(%arg0: i32, %arg1: memref<1xi32, #tpu.memory_space<smem>>) -> (i32, i32) {
    %c0_i32 = arith.constant 0 : i32
    %c0_i32_0 = arith.constant 0 : i32
    %c0_i32_1 = arith.constant 0 : i32
    return %c0_i32, %c0_i32_0 : i32, i32
  }
  func.func @transform_2(%arg0: i32, %arg1: memref<1xi32, #tpu.memory_space<smem>>) -> (i32, i32) {
    %c0_i32 = arith.constant 0 : i32
    %c0_i32_0 = arith.constant 0 : i32
    %c0_i32_1 = arith.constant 0 : i32
    return %c0_i32, %c0_i32_0 : i32, i32
  }
  func.func @transform_3(%arg0: i32, %arg1: memref<1xi32, #tpu.memory_space<smem>>) -> (i32, i32) {
    %c0_i32 = arith.constant 0 : i32
    %c0_i32_0 = arith.constant 0 : i32
    return %arg0, %c0_i32 : i32, i32
  }
}

</mosaic_0001>

<bundles_post_ra>
// kernel: highway_forward.1
= control target key start
LH: loop header
LB: loop body
LE: loop exit
PB: predicated region body
PF: predicated region fallthrough
CT: control target
= control target key end

     0   :  { %10 = vsyncpa [#allocation5], 0  ;;  %s256_s15 = smov [#allocation4]   ;;  %s312_s0 = inlined_call_operand.<no memory space> [shape: s32[1], index: 0, kind: input, shape index: {}]   ;;  %s313_s1 = inlined_call_operand.vmem [shape: f32[16,128], index: 1, kind: input, shape index: {}]   ;;  %s314_s2 = inlined_call_operand.hbm [shape: f32[128,256], index: 2, kind: input, shape index: {}]   ;;  %s315_s3 = inlined_call_operand.vmem [shape: f32[1,256], index: 3, kind: input, shape index: {}]   ;;  %s316_s4 = inlined_call_operand.vmem [shape: f32[16,128], index: 4, kind: output, shape index: {}]  }
   0x1   :  { %s18_s16 = sshll.u32 %s256_s15, 4  ;;  %s232_s0 = scalar_lea.hbm %s314_s2, 4096  ;;  %s19_s16 = int_to_ptr.vmem [resolvable:$true] %s18_s16 }
   0x2   :  { %p233_p0 = scmp.ne.s32.totalorder %s314_s2, %s232_s0  ;;  %p236_p1 = scmp.lt.u32.totalorder %s232_s0, %s314_s2 }
   0x4   :  { %p238_p2 = pnand %p236_p1, %p233_p0 }
   0x6   :  { %241 = shalt.err (!%p238_p2)
}
   0x7   :  { %s242_s23 = scalar_lea.vmem %s19_s16, 4096  ;;  %p247_p4 = scmp.lt.s32.totalorder %s19_s16, %s19_s16 }
   0x8   :  { %p243_p3 = scmp.ne.s32.totalorder %s19_s16, %s242_s23  ;;  %p248_p5 = scmp.lt.s32.totalorder %s242_s23, %s242_s23 }
   0xa   :  { %p249_p6 = por %p248_p5, %p247_p4 }
   0xc   :  { %p250_p7 = pnand %p249_p6, %p243_p3 }
   0xe   :  { %253 = shalt.err (!%p250_p7)
}
   0xf   :  { %s257_s24 = smov 256   ;;  %s258_s25 = smov 16  }
  0x10   :  { %24 = dma.hbm_to_vmem [thread:$0]  %s314_s2, 4096, %s19_s16, [#allocation5], %s257_s24, %s257_s24, %s258_s25  }
  0x11   :  { %254 = dma.done.wait [#allocation5], 4096  }
  0x12   :  { %255 = vsyncadd [#allocation5], 4294963200  ;;  %v259_v0 = vmov 0.0   ;;  %v33_v1 = vld [vmem:[#allocation4 + $0x8] sm:$0xff]  ;;  %v35_v2 = vld [vmem:[#allocation4 + $0x18] sm:$0xff]  ;;  %v66_v51 = vlaneseq }
  0x13   :  { %140 = vmatprep.mubr.f32.mxu0 %v259_v0  ;;  %146 = vmatprep.mubr.f32.mxu1 %v259_v0  ;;  %v32_v3 = vld [vmem:[#allocation4] sm:$0xff]  ;;  %v176_v4 = vpack.c.bf16 %v35_v2, %v33_v1  ;;  %v34_v5 = vld [vmem:[#allocation4 + $0x10] sm:$0xff]  ;;  %v37_v6 = vld [vmem:[#allocation4 + $0x28] sm:$0xff] }
  0x14   :  { %v39_v7 = vld [vmem:[#allocation4 + $0x38] sm:$0xff]  ;;  %v178_v8 = vpack.c.bf16 %v34_v5, %v32_v3  ;;  %v36_v10 = vld [vmem:[#allocation4 + $0x20] sm:$0xff]  ;;  %v38_v11 = vld [vmem:[#allocation4 + $0x30] sm:$0xff]  ;;  %v67_v52 = vshrl.u32 %v66_v51, 7 }
  0x15   :  { %v180_v9 = vpack.c.bf16 %v39_v7, %v37_v6  ;;  %v41_v12 = vld [vmem:[#allocation4 + $0x48] sm:$0xff]  ;;  %177 = vmatprep.subr.bf16.mxu0 %v176_v4  ;;  %208 = vmatprep.subr.bf16.mxu1 %v176_v4  ;;  %v43_v13 = vld [vmem:[#allocation4 + $0x58] sm:$0xff]  ;;  %v182_v14 = vpack.c.bf16 %v38_v11, %v36_v10  ;;  %v40_v16 = vld [vmem:[#allocation4 + $0x40] sm:$0xff] }
  0x16   :  { %179 = vmatpush1.bf16.msra.mxu0 %v178_v8  ;;  %216 = vmatpush1.bf16.msra.mxu1 %v178_v8  ;;  %v184_v15 = vpack.c.bf16 %v43_v13, %v41_v12  ;;  %v42_v17 = vld [vmem:[#allocation4 + $0x50] sm:$0xff]  ;;  %v45_v18 = vld [vmem:[#allocation4 + $0x68] sm:$0xff]  ;;  %v47_v19 = vld [vmem:[#allocation4 + $0x78] sm:$0xff]  ;;  %v72_v53 = vsub.s32 1, %v67_v52  ;;  %v68_v62 = vsub.s32 0, %v67_v52 }
  0x17   :  { %181 = vmatprep.subr.bf16.mxu0 %v180_v9  ;;  %209 = vmatprep.subr.bf16.mxu1 %v180_v9  ;;  %v186_v20 = vpack.c.bf16 %v42_v17, %v40_v16  ;;  %v188_v21 = vpack.c.bf16 %v47_v19, %v45_v18  ;;  %v44_v22 = vld [vmem:[#allocation4 + $0x60] sm:$0xff]  ;;  %v46_v23 = vld [vmem:[#allocation4 + $0x70] sm:$0xff]  ;;  %v49_v24 = vld [vmem:[#allocation4 + $0x88] sm:$0xff] }
  0x18   :  { %v51_v25 = vld [vmem:[#allocation4 + $0x98] sm:$0xff]  ;;  %v190_v26 = vpack.c.bf16 %v46_v23, %v44_v22  ;;  %v48_v28 = vld [vmem:[#allocation4 + $0x80] sm:$0xff]  ;;  %v50_v29 = vld [vmem:[#allocation4 + $0x90] sm:$0xff] }
  0x19   :  { %v192_v27 = vpack.c.bf16 %v51_v25, %v49_v24  ;;  %v53_v30 = vld [vmem:[#allocation4 + $0xa8] sm:$0xff]  ;;  %v55_v31 = vld [vmem:[#allocation4 + $0xb8] sm:$0xff]  ;;  %v194_v32 = vpack.c.bf16 %v50_v29, %v48_v28  ;;  %v52_v34 = vld [vmem:[#allocation4 + $0xa0] sm:$0xff] }
  0x1a   :  { %183 = vmatpush1.bf16.msra.mxu0 %v182_v14  ;;  %217 = vmatpush1.bf16.msra.mxu1 %v182_v14  ;;  %v196_v33 = vpack.c.bf16 %v55_v31, %v53_v30  ;;  %v54_v35 = vld [vmem:[#allocation4 + $0xb0] sm:$0xff]  ;;  %v57_v36 = vld [vmem:[#allocation4 + $0xc8] sm:$0xff]  ;;  %v59_v37 = vld [vmem:[#allocation4 + $0xd8] sm:$0xff] }
  0x1b   :  { %185 = vmatprep.subr.bf16.mxu0 %v184_v15  ;;  %210 = vmatprep.subr.bf16.mxu1 %v184_v15  ;;  %v198_v38 = vpack.c.bf16 %v54_v35, %v52_v34  ;;  %v200_v39 = vpack.c.bf16 %v59_v37, %v57_v36  ;;  %v56_v40 = vld [vmem:[#allocation4 + $0xc0] sm:$0xff]  ;;  %v58_v41 = vld [vmem:[#allocation4 + $0xd0] sm:$0xff]  ;;  %v61_v42 = vld [vmem:[#allocation4 + $0xe8] sm:$0xff] }
  0x1c   :  { %v63_v43 = vld [vmem:[#allocation4 + $0xf8] sm:$0xff]  ;;  %v202_v44 = vpack.c.bf16 %v58_v41, %v56_v40  ;;  %v60_v46 = vld [vmem:[#allocation4 + $0xe0] sm:$0xff]  ;;  %v62_v47 = vld [vmem:[#allocation4 + $0xf0] sm:$0xff] }
  0x1d   :  { %v204_v45 = vpack.c.bf16 %v63_v43, %v61_v42  ;;  %v206_v48 = vpack.c.bf16 %v62_v47, %v60_v46  ;;  %v30_v49 = vld [vmem:[%s313_s1] sm:$0xff]  ;;  %v31_v50 = vld [vmem:[%s313_s1 + $0x8] sm:$0xff] }
  0x1e   :  { %187 = vmatpush1.bf16.msra.mxu0 %v186_v20  ;;  %218 = vmatpush1.bf16.msra.mxu1 %v186_v20  ;;  %v64_v54 = vld [vmem:[%s315_s3] sm:$0x3] }
  0x1f   :  { %189 = vmatprep.subr.bf16.mxu0 %v188_v21  ;;  %211 = vmatprep.subr.bf16.mxu1 %v188_v21  ;;  %v73_v55 = vrot.slane %v64_v54, %v72_v53  ;;  %v69_v1 = vrot.slane %v64_v54, %v68_v62 }
  0x22   :  { %191 = vmatpush1.bf16.msra.mxu0 %v190_v26  ;;  %219 = vmatpush1.bf16.msra.mxu1 %v190_v26 }
  0x23   :  { %193 = vmatprep.subr.bf16.mxu0 %v192_v27  ;;  %212 = vmatprep.subr.bf16.mxu1 %v192_v27 }
  0x26   :  { %195 = vmatpush1.bf16.msra.mxu0 %v194_v32  ;;  %220 = vmatpush1.bf16.msra.mxu1 %v194_v32 }
  0x27   :  { %197 = vmatprep.subr.bf16.mxu0 %v196_v33  ;;  %213 = vmatprep.subr.bf16.mxu1 %v196_v33 }
  0x2a   :  { %199 = vmatpush1.bf16.msra.mxu0 %v198_v38  ;;  %221 = vmatpush1.bf16.msra.mxu1 %v198_v38 }
  0x2b   :  { %201 = vmatprep.subr.bf16.mxu0 %v200_v39  ;;  %214 = vmatprep.subr.bf16.mxu1 %v200_v39 }
  0x2e   :  { %203 = vmatpush1.bf16.msra.mxu0 %v202_v44  ;;  %222 = vmatpush1.bf16.msra.mxu1 %v202_v44 }
  0x2f   :  { %205 = vmatprep.subr.bf16.mxu0 %v204_v45  ;;  %215 = vmatprep.subr.bf16.mxu1 %v204_v45 }
  0x32   :  { %207 = vmatpush1.bf16.msra.mxu0 %v206_v48  ;;  %223 = vmatpush1.bf16.msra.mxu1 %v206_v48 }
  0x35   :  { %141 = vmatmul.mubr.f32.vlgmr.msra.gmra.mrb[0].mxu0 %v30_v49  ;;  %147 = vmatmul.mubr.f32.vlgmr.msra.gmra.mrb[0].mxu1 %v31_v50 }
 0x108   :  { %v142_v56 = vpop.f32.mrb[0].mxu0  ;;  %v148_v57 = vpop.f32.mrb[0].mxu1 }
 0x109   :  { %v144_v58 = vpop.f32.mrb[1].mxu0  ;;  %v150_v59 = vpop.f32.mrb[1].mxu1  ;;  %v143_v2 = vadd.f32 %v142_v56, %v69_v1  ;;  %v149_v3 = vadd.f32 %v148_v57, %v69_v1 }
 0x10a   :  { %v145_v60 = vadd.f32 %v144_v58, %v73_v55  ;;  %v151_v61 = vadd.f32 %v150_v59, %v73_v55 }
 0x10b   :  { %v153_v4 = vmax.f32 %v143_v2, 0.0  ;;  %v154_v6 = vmax.f32 %v149_v3, 0.0 }
 0x10c   :  { %v155_v63 = vmul.f32 0.5, %v145_v60  ;;  %v156_v0 = vmul.f32 0.5, %v151_v61 }
 0x10d   :  { %v163_v10 = vsub.f32 %v153_v4, %v30_v49  ;;  %v164_v12 = vsub.f32 %v154_v6, %v31_v50 }
 0x10e   :  { %228 = vtanh.f32 %v155_v63 }
 0x10f   :  { %230 = vtanh.f32 %v156_v0 }
 0x118   :  { %v229_v5 = vpop.eup %228 }
 0x119   :  { %v231_v7 = vpop.eup %230  ;;  %v159_v8 = vadd.f32 1.0, %v229_v5 }
 0x11a   :  { %v160_v9 = vadd.f32 1.0, %v231_v7 }
 0x11b   :  { %v161_v11 = vmul.f32 0.5, %v159_v8 }
 0x11c   :  { %v162_v13 = vmul.f32 0.5, %v160_v9 }
 0x11d   :  { %v165_v14 = vmul.f32 %v163_v10, %v161_v11 }
 0x11e   :  { %v166_v15 = vmul.f32 %v164_v12, %v162_v13 }
 0x11f   :  { %v167_v16 = vadd.f32 %v165_v14, %v30_v49 }
 0x120   :  { %v168_v17 = vadd.f32 %v166_v15, %v31_v50 }
 0x121   :  { %169 = vst [vmem:[%s316_s4] sm:$0xff] %v167_v16 }
 0x122   :  { %170 = vst [vmem:[%s316_s4 + $0x8] sm:$0xff] %v168_v17 }
 0x123   :  { %175 = vsyncpa [#allocation5], 1 }

</bundles_post_ra>
